<compile_context>
chip_gen: v5e
topology: v5e:2x2
jax: 0.10.0
libtpu: 0.0.40
codegen_flags: <defaults>
</compile_context>

<pallas_src>
import functools

import jax
import jax.numpy as jnp
from jax.experimental import pallas as pl
from jax.experimental.pallas import tpu as pltpu

_LANE = 128
_SUBLANE = 8

# 48 MiB: <= v7x physical VMEM (64 MiB) with headroom, > v5e's 16 MiB default
# scoped limit (which the double-buffered input blocks alone would exceed).
_VMEM_LIMIT_BYTES = 48 << 20
# What tile selection is allowed to consume (inputs x buffers + f32 temps +
# accumulator windows); leaves ~8 MiB slack under the limit.
_WORKING_BUDGET_BYTES = 40 << 20


def _round_up(x, m):
    return ((x + m - 1) // m) * m


def _pow2_lanes(x):
    """Largest 128 * 2**k that is <= max(x, 128)."""
    w = _LANE
    while w * 2 <= x:
        w *= 2
    return w


def _choose_view(shape):
    """Free (contiguous, row-major) 2-D re-view of the [B, N] input, or None.

    Goals: (a) a lane-dense last dim (multiple of 128) when N is small or its
    128-padding waste is large, so VPU lanes and grid steps aren't spent on
    padding; (b) enough rows that the "parallel" row-block axis can span both
    v7x TensorCores.
    """
    b, n = shape
    total = b * n
    padded_n = _round_up(n, _LANE)
    need_lane_fix = padded_n != n and (n < _LANE or (padded_n - n) * 4 >= n)
    need_row_fix = b < 2 * _SUBLANE and total >= (1 << 16)
    if not (need_lane_fix or need_row_fix):
        return None
    cands = [w for w in range(_LANE, min(total, 4096) + 1, _LANE)
             if total % w == 0]
    if not cands:
        return None
    good = [w for w in cands
            if (total // w) % _SUBLANE == 0 and (total // w) >= 16]
    if good:
        w = max(good)
    else:
        ok = [w for w in cands if (total // w) >= _SUBLANE]
        w = max(ok) if ok else min(cands)
    view = (total // w, w)
    return None if view == (b, n) else view


def _select_tiles(rows, cols, itemsize, tile_rows, tile_cols):
    """(tm, tn) from the VMEM working budget + v7x megacore row-block target."""
    # Per-element VMEM cost of one grid step: 2 inputs x 2 pipeline buffers at
    # the input dtype plus ~3 live float32 block temporaries in the kernel
    # body (the kernel upcasts to f32, so bf16 inputs don't shrink the temps).
    per_elem = 4 * itemsize + 12

    # Aim for >= 4 (>= 2) row blocks so the "parallel" axis splits across the
    # two v7x TensorCores; harmless on v5e/v6e (single TC).
    if rows >= 4 * _SUBLANE:
        tm_cap = _round_up(pl.cdiv(rows, 4), _SUBLANE)
    elif rows >= 2 * _SUBLANE:
        tm_cap = _round_up(pl.cdiv(rows, 2), _SUBLANE)
    else:
        tm_cap = _SUBLANE

    if tile_cols is None:
        # 128 bytes per column = 2 accumulators x 2 buffers x 8 rows x 4 B.
        tn_budget = max(_LANE,
                        _WORKING_BUDGET_BYTES // (tm_cap * per_elem + 128))
        tn = min(_round_up(cols, _LANE), _pow2_lanes(tn_budget))
    else:
        tn = tile_cols
    assert tn % _LANE == 0, "tile_cols must be a multiple of 128"

    if tile_rows is None:
        acc_bytes = 2 * 2 * _SUBLANE * tn * 4
        tm_budget = max(
            _SUBLANE,
            ((_WORKING_BUDGET_BYTES - acc_bytes) // (tn * per_elem))
            // _SUBLANE * _SUBLANE)
        tm = max(_SUBLANE, min(tm_cap, tm_budget, _round_up(rows, _SUBLANE)))
    else:
        tm = tile_rows
    assert tm % _SUBLANE == 0, "tile_rows must be a multiple of 8"
    return tm, tn


def _pinball_kernel(pred_ref, act_ref, sum_d_ref, sum_neg_ref, *,
                    n_rows, n_cols, tm, tn, row_mask, col_mask):
    i = pl.program_id(0)   # row-block axis        ("parallel")
    j = pl.program_id(1)   # column/reduction axis ("arbitrary", innermost)

    @pl.when(j == 0)
    def _():
        sum_d_ref[...] = jnp.zeros_like(sum_d_ref)
        sum_neg_ref[...] = jnp.zeros_like(sum_neg_ref)

    diff = act_ref[...].astype(jnp.float32) - pred_ref[...].astype(jnp.float32)

    # Zero the block padding of ragged boundary tiles.  Only the ragged
    # dimension(s) are masked, each comparing an iota against a scalar
    # threshold.  The select stays AHEAD of the arithmetic so garbage
    # (NaN/Inf) in the padded region of the VMEM window never propagates.
    if row_mask and col_mask:
        ok = ((jax.lax.broadcasted_iota(jnp.int32, (tm, tn), 0)
               < n_rows - i * tm)
              & (jax.lax.broadcasted_iota(jnp.int32, (tm, tn), 1)
                 < n_cols - j * tn))
        diff = jnp.where(ok, diff, 0.0)
    elif row_mask:
        ok = jax.lax.broadcasted_iota(jnp.int32, (tm, tn), 0) < n_rows - i * tm
        diff = jnp.where(ok, diff, 0.0)
    elif col_mask:
        ok = jax.lax.broadcasted_iota(jnp.int32, (tm, tn), 1) < n_cols - j * tn
        diff = jnp.where(ok, diff, 0.0)

    # Fold the tile's sublane groups into one (8, tn) slab per accumulator.
    # The reshape only splits the leading (row) axis -> layout preserving; the
    # reductions are pure VPU vreg adds (~4 VALU ops per loss vreg total:
    # sub, min, two accumulate adds).
    d3 = diff.reshape(tm // _SUBLANE, _SUBLANE, tn)
    sum_d_ref[...] += d3.sum(axis=0)
    sum_neg_ref[...] += jnp.minimum(d3, 0.0).sum(axis=0)


def pinball_loss(predictions, actuals, training_tau, *,
                 tile_rows=None, tile_cols=None, reshape_inputs=True):
    """JAX/Pallas equivalent of PinballLoss.forward (2-D [batch, seq] inputs)."""
    assert predictions.shape == actuals.shape
    assert predictions.ndim == 2, "layout: [batch, seq]"
    b, n = predictions.shape
    tau = float(training_tau)
    itemsize = jnp.dtype(predictions.dtype).itemsize

    # Free contiguous re-view for lane density / TensorCore splitting.
    if reshape_inputs and tile_rows is None and tile_cols is None:
        view = _choose_view((b, n))
        if view is not None:
            predictions = predictions.reshape(view)
            actuals = actuals.reshape(view)
    rows, cols = predictions.shape

    tm, tn = _select_tiles(rows, cols, itemsize, tile_rows, tile_cols)
    n_row_blocks = pl.cdiv(rows, tm)
    n_col_blocks = pl.cdiv(cols, tn)
    row_mask = rows % tm != 0
    col_mask = cols % tn != 0

    kernel = functools.partial(
        _pinball_kernel, n_rows=rows, n_cols=cols, tm=tm, tn=tn,
        row_mask=row_mask, col_mask=col_mask)

    cost = pl.CostEstimate(
        flops=4 * rows * cols,
        transcendentals=0,
        bytes_accessed=2 * rows * cols * itemsize
        + 2 * n_row_blocks * _SUBLANE * tn * 4,
    )

    acc = jax.ShapeDtypeStruct((n_row_blocks, _SUBLANE, tn), jnp.float32)
    sum_d, sum_neg = pl.pallas_call(
        kernel,
        out_shape=(acc, acc),
        grid_spec=pltpu.PrefetchScalarGridSpec(
            num_scalar_prefetch=0,
            grid=(n_row_blocks, n_col_blocks),
            in_specs=[
                pl.BlockSpec((tm, tn), lambda i, j: (i, j)),
                pl.BlockSpec((tm, tn), lambda i, j: (i, j)),
            ],
            # Per-row-block (8, tn) accumulators, resident across the
            # ("arbitrary") column/reduction axis.
            out_specs=(
                pl.BlockSpec((None, _SUBLANE, tn), lambda i, j: (i, 0, 0)),
                pl.BlockSpec((None, _SUBLANE, tn), lambda i, j: (i, 0, 0)),
            ),
        ),
        compiler_params=pltpu.CompilerParams(
            dimension_semantics=("parallel", "arbitrary"),
            vmem_limit_bytes=_VMEM_LIMIT_BYTES,
        ),
        cost_estimate=cost,
    )(predictions, actuals)

    # max(tau*d, (tau-1)*d) == tau*d - min(d, 0), so the total pinball loss is
    # tau*sum(d) - sum(min(d, 0)); the tiny final cross-lane reduce is here.
    total = tau * jnp.sum(sum_d) - jnp.sum(sum_neg)
    # sum(final_loss) / (shape[0] * shape[1]) * 2   (matches the PyTorch module)
    return total / (b * n) * 2.0


def _reference(predictions, actuals, tau):
    diff = actuals.astype(jnp.float32) - predictions.astype(jnp.float32)
    less_than = diff * (diff > 0).astype(jnp.float32) * tau
    greater_than = diff * (diff < 0).astype(jnp.float32) * (tau - 1.0)
    final = less_than + greater_than
    return jnp.sum(final) / (final.shape[0] * final.shape[1]) * 2.0


if __name__ == "__main__":
    key = jax.random.PRNGKey(0)
    training_tau = 0.49
    k1, k2, k3, k4, k5, k6, k7, k8 = jax.random.split(key, 8)

    def _check(preds, acts, out, name):
        ref = _reference(preds, acts, training_tau)
        assert jnp.allclose(out, ref, rtol=1e-5, atol=2e-5), (name, out, ref)

    # Case 1: aligned [8, 128]; single budget-derived tile, no masking.
    p1 = jax.random.normal(k1, (8, 128), dtype=jnp.float32)
    a1 = jax.random.normal(k2, (8, 128), dtype=jnp.float32)
    o1 = jax.block_until_ready(pinball_loss(p1, a1, training_tau))
    _check(p1, a1, o1, "case1")

    # Case 2: ragged columns + forced small tiles -> multi-step accumulation
    # along the reduction axis, column masking, 3 row blocks.
    p2 = jax.random.normal(k3, (24, 320), dtype=jnp.float32)
    a2 = jax.random.normal(k4, (24, 320), dtype=jnp.float32)
    o2 = jax.block_until_ready(
        pinball_loss(p2, a2, training_tau, tile_rows=8, tile_cols=128))
    _check(p2, a2, o2, "case2")

    # Case 3: seq < 128 -> free lane-dense re-view (64, 48) -> (24, 128),
    # ragged-row masking, 2 row blocks (v7x megacore split).
    p3 = jax.random.normal(k5, (64, 48), dtype=jnp.float32)
    a3 = jax.random.normal(k6, (64, 48), dtype=jnp.float32)
    o3 = jax.block_until_ready(pinball_loss(p3, a3, training_tau))
    _check(p3, a3, o3, "case3")

    # Case 4: bf16 inputs (f32-upcast-aware tile budget), 4 row blocks.
    p4 = jax.random.normal(k7, (32, 256), dtype=jnp.bfloat16)
    a4 = jax.random.normal(k8, (32, 256), dtype=jnp.bfloat16)
    o4 = jax.block_until_ready(pinball_loss(p4, a4, training_tau))
    _check(p4, a4, o4, "case4")

    print("KERNEL_OK")
</pallas_src>

<mosaic_0001>
module attributes {stable_mosaic.version = 11 : i64} {
  func.func @_pinball_kernel(%arg0: i32, %arg1: i32, %arg2: memref<8x128xf32, #tpu.memory_space<vmem>>, %arg3: memref<8x128xf32, #tpu.memory_space<vmem>>, %arg4: memref<1x8x128xf32, #tpu.memory_space<vmem>>, %arg5: memref<1x8x128xf32, #tpu.memory_space<vmem>>) attributes {dimension_semantics = [#tpu.dimension_semantics<parallel>, #tpu.dimension_semantics<arbitrary>], iteration_bounds = array<i64: 1, 1>, scalar_prefetch = 0 : i64, scratch_operands = 0 : i64, tpu.core_type = #tpu.core_type<tc>, window_params = [{transform_indices = @transform_0, window_bounds = array<i64: 8, 128>}, {transform_indices = @transform_1, window_bounds = array<i64: 8, 128>}, {transform_indices = @transform_2, window_bounds = array<i64: 1, 8, 128>}, {transform_indices = @transform_3, window_bounds = array<i64: 1, 8, 128>}]} {
    %c0_i32 = arith.constant 0 : i32
    %0 = arith.cmpi eq, %arg1, %c0_i32 : i32
    %1 = arith.extui %0 : i1 to i32
    %c0_i32_0 = arith.constant 0 : i32
    %2 = arith.cmpi ne, %1, %c0_i32_0 : i32
    scf.if %2 {
      %cst_18 = arith.constant 0.000000e+00 : f32
      %23 = vector.broadcast %cst_18 : f32 to vector<8x128xf32>
      %c0_19 = arith.constant 0 : index
      %c0_20 = arith.constant 0 : index
      %c0_21 = arith.constant 0 : index
      %24 = vector.load %arg4[%c0_19, %c0_20, %c0_21] : memref<1x8x128xf32, #tpu.memory_space<vmem>>, vector<1x8x128xf32>
      %25 = vector.shape_cast %24 : vector<1x8x128xf32> to vector<8x128xf32>
      %26 = vector.shape_cast %23 : vector<8x128xf32> to vector<1x8x128xf32>
      tpu.vector_store %arg4[%c0_19, %c0_20, %c0_21], %26 {strides = array<i32>} : memref<1x8x128xf32, #tpu.memory_space<vmem>>, vector<1x8x128xf32>,
      %cst_22 = arith.constant 0.000000e+00 : f32
      %27 = vector.broadcast %cst_22 : f32 to vector<8x128xf32>
      %c0_23 = arith.constant 0 : index
      %c0_24 = arith.constant 0 : index
      %c0_25 = arith.constant 0 : index
      %28 = vector.load %arg5[%c0_23, %c0_24, %c0_25] : memref<1x8x128xf32, #tpu.memory_space<vmem>>, vector<1x8x128xf32>
      %29 = vector.shape_cast %28 : vector<1x8x128xf32> to vector<8x128xf32>
      %30 = vector.shape_cast %27 : vector<8x128xf32> to vector<1x8x128xf32>
      tpu.vector_store %arg5[%c0_23, %c0_24, %c0_25], %30 {strides = array<i32>} : memref<1x8x128xf32, #tpu.memory_space<vmem>>, vector<1x8x128xf32>,
    } else {
    }
    %c0 = arith.constant 0 : index
    %c0_1 = arith.constant 0 : index
    %3 = vector.load %arg3[%c0, %c0_1] : memref<8x128xf32, #tpu.memory_space<vmem>>, vector<8x128xf32>
    %c0_2 = arith.constant 0 : index
    %c0_3 = arith.constant 0 : index
    %4 = vector.load %arg2[%c0_2, %c0_3] : memref<8x128xf32, #tpu.memory_space<vmem>>, vector<8x128xf32>
    %5 = arith.subf %3, %4 : vector<8x128xf32>
    %6 = vector.shape_cast %5 : vector<8x128xf32> to vector<1x8x128xf32>
    %c0_4 = arith.constant 0 : index
    %c0_5 = arith.constant 0 : index
    %c0_6 = arith.constant 0 : index
    %7 = vector.load %arg4[%c0_4, %c0_5, %c0_6] : memref<1x8x128xf32, #tpu.memory_space<vmem>>, vector<1x8x128xf32>
    %8 = vector.shape_cast %7 : vector<1x8x128xf32> to vector<8x128xf32>
    %cst = arith.constant dense<0.000000e+00> : vector<8x128xf32>
    %9 = vector.multi_reduction <add>, %6, %cst [0] : vector<1x8x128xf32> to vector<8x128xf32>
    %10 = arith.addf %8, %9 : vector<8x128xf32>
    %c0_7 = arith.constant 0 : index
    %c0_8 = arith.constant 0 : index
    %c0_9 = arith.constant 0 : index
    %11 = vector.load %arg4[%c0_7, %c0_8, %c0_9] : memref<1x8x128xf32, #tpu.memory_space<vmem>>, vector<1x8x128xf32>
    %12 = vector.shape_cast %11 : vector<1x8x128xf32> to vector<8x128xf32>
    %13 = vector.shape_cast %10 : vector<8x128xf32> to vector<1x8x128xf32>
    tpu.vector_store %arg4[%c0_7, %c0_8, %c0_9], %13 {strides = array<i32>} : memref<1x8x128xf32, #tpu.memory_space<vmem>>, vector<1x8x128xf32>,
    %c0_10 = arith.constant 0 : index
    %c0_11 = arith.constant 0 : index
    %c0_12 = arith.constant 0 : index
    %14 = vector.load %arg5[%c0_10, %c0_11, %c0_12] : memref<1x8x128xf32, #tpu.memory_space<vmem>>, vector<1x8x128xf32>
    %15 = vector.shape_cast %14 : vector<1x8x128xf32> to vector<8x128xf32>
    %cst_13 = arith.constant 0.000000e+00 : f32
    %16 = vector.broadcast %cst_13 : f32 to vector<1x8x128xf32>
    %17 = arith.minimumf %6, %16 : vector<1x8x128xf32>
    %cst_14 = arith.constant dense<0.000000e+00> : vector<8x128xf32>
    %18 = vector.multi_reduction <add>, %17, %cst_14 [0] : vector<1x8x128xf32> to vector<8x128xf32>
    %19 = arith.addf %15, %18 : vector<8x128xf32>
    %c0_15 = arith.constant 0 : index
    %c0_16 = arith.constant 0 : index
    %c0_17 = arith.constant 0 : index
    %20 = vector.load %arg5[%c0_15, %c0_16, %c0_17] : memref<1x8x128xf32, #tpu.memory_space<vmem>>, vector<1x8x128xf32>
    %21 = vector.shape_cast %20 : vector<1x8x128xf32> to vector<8x128xf32>
    %22 = vector.shape_cast %19 : vector<8x128xf32> to vector<1x8x128xf32>
    tpu.vector_store %arg5[%c0_15, %c0_16, %c0_17], %22 {strides = array<i32>} : memref<1x8x128xf32, #tpu.memory_space<vmem>>, vector<1x8x128xf32>,
    return
  }
  func.func @transform_0(%arg0: i32, %arg1: i32) -> (i32, i32) {
    %c0_i32 = arith.constant 0 : i32
    return %arg0, %arg1 : i32, i32
  }
  func.func @transform_1(%arg0: i32, %arg1: i32) -> (i32, i32) {
    %c0_i32 = arith.constant 0 : i32
    return %arg0, %arg1 : i32, i32
  }
  func.func @transform_2(%arg0: i32, %arg1: i32) -> (i32, i32, i32) {
    %c0_i32 = arith.constant 0 : i32
    %c0_i32_0 = arith.constant 0 : i32
    %c0_i32_1 = arith.constant 0 : i32
    return %arg0, %c0_i32, %c0_i32_0 : i32, i32, i32
  }
  func.func @transform_3(%arg0: i32, %arg1: i32) -> (i32, i32, i32) {
    %c0_i32 = arith.constant 0 : i32
    %c0_i32_0 = arith.constant 0 : i32
    %c0_i32_1 = arith.constant 0 : i32
    return %arg0, %c0_i32, %c0_i32_0 : i32, i32, i32
  }
}

</mosaic_0001>

<bundles_post_ra>
// kernel: tpu_custom_call.1
= control target key start
LH: loop header
LB: loop body
LE: loop exit
PB: predicated region body
PF: predicated region fallthrough
CT: control target
= control target key end

     0   :  { %9 = vsyncpa [#allocation3], 0  ;;  %s240_s0 = inlined_call_operand.hbm [shape: f32[8,128], index: 0, kind: input, shape index: {}]   ;;  %s241_s1 = inlined_call_operand.hbm [shape: f32[8,128], index: 1, kind: input, shape index: {}]   ;;  %s242_s2 = inlined_call_operand.hbm [shape: f32[1,8,128], index: 2, kind: output, shape index: {0}]   ;;  %s243_s3 = inlined_call_operand.hbm [shape: f32[1,8,128], index: 3, kind: output, shape index: {1}]  }
   0x1   :  { %10 = vsyncpa [#allocation6], 0 }
   0x2   :  { %11 = vsyncpa [#allocation4], 0 }
   0x3   :  { %12 = vsyncpa [#allocation9], 0  ;;  %s18_s14 = sshll.u32 %s240_s0, 4  ;;  %s204_s15 = smov [#allocation2]   ;;  %s19_s14 = int_to_ptr.hbm [resolvable:$true] %s18_s14 }
   0x4   :  { %s20_s16 = sshll.u32 %s204_s15, 4  ;;  %s29_s19 = sshll.u32 %s241_s1, 4  ;;  %s21_s16 = int_to_ptr.vmem [resolvable:$true] %s20_s16  ;;  %s30_s19 = int_to_ptr.hbm [resolvable:$true] %s29_s19 }
   0x5   :  { %23 = dma.hbm_to_vmem [thread:$0]  %s19_s14, 128, %s21_s16, [#allocation3]  }
   0x6   :  { %s205_s20 = smov [#allocation5]  }
   0x7   :  { %s31_s21 = sshll.u32 %s205_s20, 4  ;;  %s32_s21 = int_to_ptr.vmem [resolvable:$true] %s31_s21 }
   0x8   :  { %34 = dma.hbm_to_vmem [thread:$0]  %s30_s19, 128, %s32_s21, [#allocation6]  }
   0x9   :  { %196 = dma.done.wait [#allocation3], 128  }
   0xa   :  { %197 = vsyncadd [#allocation3], 4294967168 }
   0xb   :  { %198 = dma.done.wait [#allocation6], 128  }
   0xc   :  { %199 = vsyncadd [#allocation6], 4294967168  ;;  %v49_v0 = vld [vmem:[#allocation5] sm:$0xff]  ;;  %v50_v1 = vld [vmem:[#allocation2] sm:$0xff]  ;;  %s206_s0 = smov [#allocation7]   ;;  %s68_s25 = sshll.u32 %s242_s2, 4  ;;  %s69_s25 = int_to_ptr.hbm [resolvable:$true] %s68_s25 }
   0xd   :  { %s66_s22 = sshll.u32 %s206_s0, 4  ;;  %v51_v2 = vsub.f32 %v49_v0, %v50_v1  ;;  %s207_s1 = smov [#allocation8]   ;;  %s67_s22 = int_to_ptr.vmem [resolvable:$true] %s66_s22 }
   0xe   :  { %s77_s26 = sshll.u32 %s207_s1, 4  ;;  %s79_s29 = sshll.u32 %s243_s3, 4  ;;  %s78_s26 = int_to_ptr.vmem [resolvable:$true] %s77_s26  ;;  %s80_s29 = int_to_ptr.hbm [resolvable:$true] %s79_s29 }
   0xf   :  { %v57_v3 = vmin.f32 %v51_v2, 0.0  ;;  %55 = vst [vmem:[#allocation7] sm:$0xff] %v51_v2 }
  0x10   :  { %71 = dma.vmem_to_hbm [thread:$0]  %s67_s22, 128, %s69_s25, [#allocation4]  }
  0x11   :  { %60 = vst [vmem:[#allocation8] sm:$0xff] %v57_v3 }
  0x12   :  { %82 = dma.vmem_to_hbm [thread:$0]  %s78_s26, 128, %s80_s29, [#allocation9]  }
  0x13   :  { %200 = dma.done.wait [#allocation4], 128  }
  0x14   :  { %201 = vsyncadd [#allocation4], 4294967168 }
  0x15   :  { %202 = dma.done.wait [#allocation9], 128  }
  0x16   :  { %203 = vsyncadd [#allocation9], 4294967168 }
  0x17   :  { %91 = vsyncpa [#allocation3], 1 }
  0x18   :  { %92 = vsyncpa [#allocation6], 1 }
  0x19   :  { %93 = vsyncpa [#allocation4], 1 }
  0x1a   :  { %94 = vsyncpa [#allocation9], 1 }

</bundles_post_ra>
